<compile_context>
chip_gen: v6e
topology: v6e:2x2x1
jax: 0.10.0
libtpu: 0.0.40
codegen_flags: <defaults>
</compile_context>

<pallas_src>
import functools

import jax
import jax.numpy as jnp
from jax import lax
from jax.experimental import pallas as pl
from jax.experimental.pallas import tpu as pltpu


def _sdpa_kernel(q_ref, k_ref, v_ref, o_ref, *, bk, sk, inv_scale):
    # q_ref: (Sq, D), k_ref: (Bk*Sk, D), v_ref: (Sk, Dv), o_ref: (Bk*Sq, Dv)
    q = q_ref[...] * inv_scale                     # (Sq, D) f32, scale folded in
    v = v_ref[...]                                 # (Sk, Dv)

    # Per-batch scores, statically unrolled (Bk is tiny, fully visible to LLO).
    scores = []
    for b in range(bk):
        kb = k_ref[b * sk:(b + 1) * sk, :]         # (Sk, D), static slice
        sb = lax.dot_general(                      # contract last dims, no .T
            q, kb,
            dimension_numbers=(((1,), (1,)), ((), ())),
            preferred_element_type=jnp.float32,
        )                                          # (Sq, Sk)
        scores.append(sb)
    s = jnp.concatenate(scores, axis=0)            # (Bk*Sq, Sk)

    # Numerically stable softmax over the last (lane) axis; exact divide.
    s = s - jnp.max(s, axis=-1, keepdims=True)
    p = jnp.exp(s)
    p = p / jnp.sum(p, axis=-1, keepdims=True)

    # dropout(p=0) == identity, then one flat MXU push:
    # (Bk*Sq, Sk) @ (Sk, Dv) -> (Bk*Sq, Dv) == one full (8,128) f32 vreg.
    o = jnp.dot(p, v, preferred_element_type=jnp.float32)
    o_ref[...] = o.astype(o_ref.dtype)


def sdpa_pallas(q, k, v, scale_factor):
    """q: (1, Sq, D), k: (Bk, Sk, D), v: (1, Sk, Dv) -> (Bk, Sq, Dv)."""
    _, sq, d = q.shape
    bk, sk, _ = k.shape
    dv = v.shape[-1]

    # Free row-major reshapes: contiguous, sublane-dense DMAs into the kernel.
    q2 = q.reshape(sq, d)            # (4, 16)
    k2 = k.reshape(bk * sk, d)       # (8, 16)
    v2 = v.reshape(sk, dv)           # (4, 128)

    kernel = functools.partial(
        _sdpa_kernel, bk=bk, sk=sk, inv_scale=1.0 / float(scale_factor))

    out = pl.pallas_call(
        kernel,
        out_shape=jax.ShapeDtypeStruct((bk * sq, dv), q.dtype),   # (8, 128)
        in_specs=[
            pl.BlockSpec(memory_space=pltpu.MemorySpace.VMEM),    # q
            pl.BlockSpec(memory_space=pltpu.MemorySpace.VMEM),    # k
            pl.BlockSpec(memory_space=pltpu.MemorySpace.VMEM),    # v
        ],
        out_specs=pl.BlockSpec(memory_space=pltpu.MemorySpace.VMEM),
    )(q2, k2, v2)

    # Free reshape back to the PyTorch output layout.
    return out.reshape(bk, sq, dv)


def sdpa_reference(q, k, v, scale_factor):
    s = jnp.einsum("aqd,bkd->bqk", q, k) / scale_factor
    p = jax.nn.softmax(s, axis=-1)
    return jnp.einsum("bqk,akv->bqv", p, v)


if __name__ == "__main__":
    key = jax.random.PRNGKey(0)
    kq, kk, kv = jax.random.split(key, 3)

    # Shapes from the module's globals: q (1,4,16), k (2,4,16), v (1,4,128)
    q = jax.random.normal(kq, (1, 4, 16), dtype=jnp.float32)
    k = jax.random.normal(kk, (2, 4, 16), dtype=jnp.float32)
    v = jax.random.normal(kv, (1, 4, 128), dtype=jnp.float32)

    scale_factor = 4.0  # e.g. sqrt(head_dim) = sqrt(16)

    out = sdpa_pallas(q, k, v, scale_factor)
    out = jax.block_until_ready(out)

    ref = sdpa_reference(q, k, v, scale_factor)
    assert out.shape == (2, 4, 128), out.shape
    assert jnp.allclose(out, ref, atol=1e-4, rtol=1e-4), "mismatch vs reference"

    print("KERNEL_OK")
</pallas_src>

<mosaic_0001>
module attributes {stable_mosaic.version = 11 : i64} {
  func.func @_sdpa_kernel(%arg0: memref<4x16xf32, #tpu.memory_space<vmem>>, %arg1: memref<8x16xf32, #tpu.memory_space<vmem>>, %arg2: memref<4x128xf32, #tpu.memory_space<vmem>>, %arg3: memref<8x128xf32, #tpu.memory_space<vmem>>) attributes {dimension_semantics = [], scalar_prefetch = 0 : i64, scratch_operands = 0 : i64, tpu.core_type = #tpu.core_type<tc>} {
    %c0 = arith.constant 0 : index
    %c0_0 = arith.constant 0 : index
    %0 = vector.load %arg0[%c0, %c0_0] : memref<4x16xf32, #tpu.memory_space<vmem>>, vector<4x16xf32>
    %cst = arith.constant 2.500000e-01 : f32
    %1 = vector.broadcast %cst : f32 to vector<4x16xf32>
    %2 = arith.mulf %0, %1 : vector<4x16xf32>
    %c0_1 = arith.constant 0 : index
    %c0_2 = arith.constant 0 : index
    %3 = vector.load %arg2[%c0_1, %c0_2] : memref<4x128xf32, #tpu.memory_space<vmem>>, vector<4x128xf32>
    %c0_3 = arith.constant 0 : index
    %c0_4 = arith.constant 0 : index
    %4 = vector.load %arg1[%c0_3, %c0_4] : memref<8x16xf32, #tpu.memory_space<vmem>>, vector<4x16xf32>
    %cst_5 = arith.constant dense<0.000000e+00> : vector<4x4xf32>
    %5 = tpu.matmul %2, %4, %cst_5 {dimension_numbers = #tpu.dot_dimension_numbers<[1], [1], [0], [0], [0, 0, 1, 0], [], []>} : vector<4x16xf32>, vector<4x16xf32>, vector<4x4xf32> -> vector<4x4xf32>
    %c4 = arith.constant 4 : index
    %c0_6 = arith.constant 0 : index
    %6 = vector.load %arg1[%c4, %c0_6] : memref<8x16xf32, #tpu.memory_space<vmem>>, vector<4x16xf32>
    %cst_7 = arith.constant dense<0.000000e+00> : vector<4x4xf32>
    %7 = tpu.matmul %2, %6, %cst_7 {dimension_numbers = #tpu.dot_dimension_numbers<[1], [1], [0], [0], [0, 0, 1, 0], [], []>} : vector<4x16xf32>, vector<4x16xf32>, vector<4x4xf32> -> vector<4x4xf32>
    %8 = tpu.concatenate %5, %7 in 0 : vector<4x4xf32>, vector<4x4xf32> -> vector<8x4xf32>
    %cst_8 = arith.constant dense<0xFF800000> : vector<8xf32>
    %9 = vector.multi_reduction <maximumf>, %8, %cst_8 [1] : vector<8x4xf32> to vector<8xf32>
    %10 = vector.shape_cast %9 : vector<8xf32> to vector<8x1xf32>
    %11 = vector.broadcast %10 : vector<8x1xf32> to vector<8x4xf32>
    %12 = arith.subf %8, %11 : vector<8x4xf32>
    %13 = math.exp %12 : vector<8x4xf32>
    %cst_9 = arith.constant dense<0.000000e+00> : vector<8xf32>
    %14 = vector.multi_reduction <add>, %13, %cst_9 [1] : vector<8x4xf32> to vector<8xf32>
    %15 = vector.shape_cast %14 : vector<8xf32> to vector<8x1xf32>
    %16 = vector.broadcast %15 : vector<8x1xf32> to vector<8x4xf32>
    %17 = arith.divf %13, %16 : vector<8x4xf32>
    %cst_10 = arith.constant dense<0.000000e+00> : vector<8x128xf32>
    %18 = tpu.matmul %17, %3, %cst_10 {dimension_numbers = #tpu.dot_dimension_numbers<[1], [0], [0], [1], [0, 0, 1, 1], [], []>} : vector<8x4xf32>, vector<4x128xf32>, vector<8x128xf32> -> vector<8x128xf32>
    %c0_11 = arith.constant 0 : index
    %c0_12 = arith.constant 0 : index
    %19 = vector.load %arg3[%c0_11, %c0_12] : memref<8x128xf32, #tpu.memory_space<vmem>>, vector<8x128xf32>
    tpu.vector_store %arg3[%c0_11, %c0_12], %18 {strides = array<i32>} : memref<8x128xf32, #tpu.memory_space<vmem>>, vector<8x128xf32>,
    return
  }
}

</mosaic_0001>

<bundles_post_ra>
// kernel: tpu_custom_call.1
= control target key start
LH: loop header
LB: loop body
LE: loop exit
PB: predicated region body
PF: predicated region fallthrough
CT: control target
= control target key end

     0   :  { %8 = vsyncpa [#allocation3], 0  ;;  %s481_s0 = inlined_call_operand.hbm [shape: f32[4,16], index: 0, kind: input, shape index: {}]   ;;  %s482_s1 = inlined_call_operand.hbm [shape: f32[8,16], index: 1, kind: input, shape index: {}]   ;;  %s483_s2 = inlined_call_operand.hbm [shape: f32[4,128], index: 2, kind: input, shape index: {}]   ;;  %s484_s3 = inlined_call_operand.hbm [shape: f32[8,128], index: 3, kind: output, shape index: {}]  }
   0x1   :  { %9 = vsyncpa [#allocation6], 0 }
   0x2   :  { %10 = vsyncpa [#allocation4], 0  ;;  %s438_s12 = smov [#allocation5]   ;;  %s439_s14 = smov [#allocation2]  }
   0x3   :  { %s27_s13 = sshll.u32 %s438_s12, 4  ;;  %s17_s15 = sshll.u32 %s439_s14, 4  ;;  %s28_s13 = int_to_ptr.vmem [resolvable:$true] %s27_s13  ;;  %s18_s15 = int_to_ptr.vmem [resolvable:$true] %s17_s15 }
   0x4   :  { %s360_s16 = scalar_lea.vmem %s28_s13, 128  ;;  %p365_p1 = scmp.lt.s32.totalorder %s28_s13, %s28_s13 }
   0x5   :  { %p361_p0 = scmp.ne.s32.totalorder %s28_s13, %s360_s16  ;;  %p366_p2 = scmp.lt.s32.totalorder %s360_s16, %s360_s16 }
   0x7   :  { %p367_p3 = por %p366_p2, %p365_p1 }
   0x9   :  { %p368_p4 = pnand %p367_p3, %p361_p0 }
   0xb   :  { %371 = shalt.err (!%p368_p4)
}
   0xc   :  { %30 = dma.hbm_to_vmem [thread:$0]  %s482_s1, 128, %s28_s13, [#allocation6]  }
   0xd   :  { %s380_s19 = scalar_lea.vmem %s18_s15, 64  ;;  %p385_p6 = scmp.lt.s32.totalorder %s18_s15, %s18_s15 }
   0xe   :  { %p381_p5 = scmp.ne.s32.totalorder %s18_s15, %s380_s19  ;;  %p386_p7 = scmp.lt.s32.totalorder %s380_s19, %s380_s19 }
  0x10   :  { %p387_p8 = por %p386_p7, %p385_p6 }
  0x12   :  { %p388_p9 = pnand %p387_p8, %p381_p5 }
  0x14   :  { %391 = shalt.err (!%p388_p9)
}
  0x15   :  { %20 = dma.hbm_to_vmem [thread:$0]  %s481_s0, 64, %s18_s15, [#allocation3]  }
  0x16   :  { %s440_s22 = smov [#allocation7]  }
  0x17   :  { %s37_s23 = sshll.u32 %s440_s22, 4  ;;  %s38_s23 = int_to_ptr.vmem [resolvable:$true] %s37_s23 }
  0x18   :  { %s400_s24 = scalar_lea.vmem %s38_s23, 64  ;;  %p405_p11 = scmp.lt.s32.totalorder %s38_s23, %s38_s23 }
  0x19   :  { %p401_p10 = scmp.ne.s32.totalorder %s38_s23, %s400_s24  ;;  %p406_p12 = scmp.lt.s32.totalorder %s400_s24, %s400_s24 }
  0x1b   :  { %p407_p13 = por %p406_p12, %p405_p11 }
  0x1d   :  { %p408_p0 = pnand %p407_p13, %p401_p10 }
  0x1f   :  { %411 = shalt.err (!%p408_p0)
}
  0x20   :  { %40 = dma.hbm_to_vmem [thread:$0]  %s483_s2, 64, %s38_s23, [#allocation6]  }
  0x21   :  { %432 = dma.done.wait [#allocation3], 64  }
  0x22   :  { %433 = vsyncadd [#allocation3], 4294967232 }
  0x23   :  { %434 = dma.done.wait [#allocation6], 192  }
  0x24   :  { %435 = vsyncadd [#allocation6], 4294967104  ;;  %v441_v0 = vmov 0.0   ;;  %vm442_vm0 = vmmov 0   ;;  %vm54_vm1 = vcmask 130048   ;;  %vm208_vm2 = vcmask 1043456  }
  0x25   :  { %327 = vmatprep.subr.mxu0 %v441_v0  ;;  %332 = vmatprep.subr.mxu1 %v441_v0  ;;  %v53_v1 = vld [vmem:[#allocation5] sm:$0xf]  ;;  %v131_v2 = vld [vmem:[#allocation5 + $0x4] sm:$0xf]  ;;  %v50_v3 = vld [vmem:[#allocation2] sm:$0xf] }
  0x26   :  { %329 = vmatprep.mubr.msk.f32.mxu0 %vm442_vm0, %v441_v0  ;;  %334 = vmatprep.mubr.msk.f32.mxu1 %vm442_vm0, %v441_v0  ;;  %v51_v4 = vmul.f32 0.25, %v50_v3  ;;  %vm210_vm3 = vcmask 31744   ;;  %v52_v17 = vld [vmem:[#allocation7] sm:$0xf]  ;;  %s443_s0 = smov [#allocation8]  }
  0x27   :  { %328 = vmatpush3.xpose.msk.msra.mxu0 %vm54_vm1, %v53_v1  ;;  %333 = vmatpush3.xpose.msk.msra.mxu1 %vm54_vm1, %v131_v2  ;;  %s305_s2 = sshll.u32 %s443_s0, 4  ;;  %s306_s2 = int_to_ptr.vmem [resolvable:$true] %s305_s2 }
  0x28   :  { %337 = vmatprep.subr.mxu0 %v441_v0  ;;  %s412_s26 = scalar_lea.vmem %s306_s2, 128  ;;  %p417_p2 = scmp.lt.s32.totalorder %s306_s2, %s306_s2 }
  0x29   :  { %p413_p1 = scmp.ne.s32.totalorder %s306_s2, %s412_s26  ;;  %p418_p3 = scmp.lt.s32.totalorder %s412_s26, %s412_s26 }
  0x2a   :  { %330 = vmatmul.mubr.msk.f32.vlgmr.msra.gmra.mxu0 %vm54_vm1, %v51_v4  ;;  %335 = vmatmul.mubr.msk.f32.vlgmr.msra.gmra.mxu1 %vm54_vm1, %v51_v4 }
  0x2b   :  { %339 = vmatprep.mubr.msk.f32.mxu0 %vm442_vm0, %v441_v0  ;;  %338 = vmatpush3.msk.msra.mxu0 %vm208_vm2, %v52_v17  ;;  %p419_p4 = por %p418_p3, %p417_p2 }
  0x2d   :  { %p420_p5 = pnand %p419_p4, %p413_p1 }
  0xea   :  { %v127_v5 = vpop.f32.mrf.mxu0  ;;  %v201_v6 = vpop.f32.mrf.mxu1 }
  0xeb   :  { %v206_v7 = vrot.slane %v201_v6, 4 }
  0xec   :  { %v331_v8 = vpop.f32.mrf.mxu0  ;;  %v336_v9 = vpop.f32.mrf.mxu1 }
  0xed   :  { %v209_v10 = vsel %vm208_vm2, %v127_v5, %v206_v7 }
  0xee   :  { %v211_v11 = vsel %vm210_vm3, %v209_v10, -inf }
  0xef   :  { %212 = vmax.xlane.f32.xlu0 %v211_v11 }
 0x178   :  { %v213_v12 = vpop.xlane.xlu0 %212 }
 0x179   :  { %v214_v13 = vsub.f32 %v209_v10, %v213_v12 }
 0x17b   :  { %v215_v14 = vmul.f32 1.442695, %v214_v13 }
 0x17d   :  { %348 = vpow2.f32 %v215_v14 }
 0x18a   :  { %v349_v15 = vpop.eup %348 }
 0x18b   :  { %v217_v16 = vsel %vm210_vm3, %v349_v15, 0.0 }
 0x18c   :  { %218 = vadd.xlane.f32.xlu0 %v217_v16 }
 0x215   :  { %v219_v18 = vpop.xlane.xlu0 %218 }
 0x216   :  { %350 = vrcp.f32 %v219_v18 }
 0x223   :  { %v351_v19 = vpop.eup %350 }
 0x224   :  { %v221_v20 = vmul.f32 %v351_v19, %v349_v15 }
 0x226   :  { %340 = vmatmul.mubr.msk.f32.vlgmr.msra.gmra.mxu0 %vm210_vm3, %v221_v20 }
 0x2e6   :  { %v294_v21 = vpop.f32.mrf.mxu0 }
 0x2e7   :  { %298 = vst [vmem:[#allocation8] sm:$0xff] %v294_v21 }
 0x2e8   :  { %v341_v22 = vpop.f32.mrf.mxu0 }
 0x2e9   :  { %423 = shalt.err (!%p420_p5)
}
 0x2ea   :  { %308 = dma.vmem_to_hbm [thread:$0]  %s306_s2, 128, %s484_s3, [#allocation4]  }
 0x2eb   :  { %436 = dma.done.wait [#allocation4], 128  }
 0x2ec   :  { %437 = vsyncadd [#allocation4], 4294967168 }
 0x2ed   :  { %312 = vsyncpa [#allocation3], 1 }
 0x2ee   :  { %313 = vsyncpa [#allocation6], 1 }
 0x2ef   :  { %314 = vsyncpa [#allocation4], 1 }

</bundles_post_ra>
